<compile_context>
chip_gen: v6e
topology: v6e:2x2x1
jax: 0.10.0
libtpu: 0.0.40
codegen_flags: <defaults>
</compile_context>

<pallas_src>
import math

import jax
import jax.numpy as jnp
from jax.experimental import pallas as pl
from jax.experimental.pallas import tpu as pltpu

_LANE = 128


def _cdiv(a, b):
    return -(-a // b)


def _round_up(a, b):
    return _cdiv(a, b) * b


def _num_tensorcores():
    """Best-effort TensorCore-per-chip count (2 on v7x/v4/v5p, else 1)."""
    try:
        kind = jax.devices()[0].device_kind.lower()
    except Exception:
        kind = ""
    if any(tag in kind for tag in ("v7", "7x", "v4", "v5p")):
        return 2
    try:
        info = pltpu.get_tpu_info()
        for name in ("num_tensorcores", "num_tensor_cores", "num_cores",
                     "tensorcores_per_chip", "cores_per_chip"):
            v = getattr(info, name, None)
            if isinstance(v, int) and 1 <= v <= 4:
                return v
    except Exception:
        pass
    return 1


def _make_kernel(n, s, inner, steps_total, nb, num_splits):
    has_partial = (nb % s) != 0                    # last block only partially valid
    has_idle = (num_splits * inner) > steps_total  # trailing no-op step(s)
    last_b = steps_total - 1
    tail_rows = nb - last_b * s                    # valid block rows in last step

    def kernel(x_ref, t_ref, o_ref, acc_ref):
        # x_ref/t_ref: (N, S, 128) feature blocks (native dtype, cast in-kernel).
        # acc_ref: VMEM (4, N, 128) f32 lane-partial sums:
        #   [0] bce elementwise loss, [1] sigmoid(x)*t, [2] sigmoid(x), [3] t
        # o_ref: (1, 4, N) per-split totals, written on the last inner step.
        k = pl.program_id(1)
        b = pl.program_id(0) * inner + k           # global feature-block step

        @pl.when(k == 0)
        def _init():
            acc_ref[...] = jnp.zeros_like(acc_ref)

        def accumulate(x, t):
            # One exp per element, reused for the BCE log term and the sigmoid.
            e = jnp.exp(-jnp.abs(x))
            nonneg = x >= 0.0                      # predicate computed once
            one_p_e = 1.0 + e
            inv = pl.reciprocal(one_p_e, approx=True)
            inv = inv * (2.0 - one_p_e * inv)      # 1 Newton step -> ~f32-exact
            p = jnp.where(nonneg, 1.0, e) * inv    # sigmoid(x), no inf path
            bce = jnp.where(nonneg, x, 0.0) - x * t + jnp.log1p(e)
            # Reduce only over the feature-block (sublane) axis in the hot loop;
            # a single stacked add updates the lane-dense accumulator.
            acc_ref[...] += jnp.stack(
                [jnp.sum(bce, axis=1), jnp.sum(p * t, axis=1),
                 jnp.sum(p, axis=1), jnp.sum(t, axis=1)])

        def accumulate_from_refs():
            accumulate(x_ref[...].astype(jnp.float32),
                       t_ref[...].astype(jnp.float32))

        if has_partial:
            # Non-tail steps pay no masking cost; the tail step replaces the
            # out-of-range block rows (whose DMA'd contents are unspecified)
            # with values that contribute ~0 to every accumulated sum.
            @pl.when(b < last_b)
            def _bulk():
                accumulate_from_refs()

            @pl.when(b == last_b)
            def _tail():
                rows = jax.lax.broadcasted_iota(jnp.int32, (n, s, _LANE), 1)
                valid = rows < tail_rows
                xm = jnp.where(valid, x_ref[...].astype(jnp.float32), -100.0)
                tm = jnp.where(valid, t_ref[...].astype(jnp.float32), 0.0)
                accumulate(xm, tm)
        elif has_idle:
            @pl.when(b < steps_total)
            def _bulk():
                accumulate_from_refs()
        else:
            accumulate_from_refs()

        @pl.when(k == inner - 1)
        def _finish():
            # One cross-lane (XLU) reduction per split.
            o_ref[0] = jnp.sum(acc_ref[...], axis=-1)

    return kernel


def bce_dice_loss(logits, target):
    """Pallas TPU implementation of BCEDiceLoss.forward(input, target)."""
    n = logits.shape[0]
    f = int(math.prod(logits.shape[1:]))

    x = logits.reshape(n, f)
    t = target.reshape(n, f)

    # ---- lane alignment (copy-free when F is already a multiple of 128) -----
    nb = _cdiv(f, _LANE)
    lane_pad = nb * _LANE - f
    if lane_pad:
        # Fallback only when F is not 128-aligned: pad with values whose BCE and
        # sigmoid contributions underflow to ~0 in f32 (x=-100, t=0).
        x = jnp.pad(x, ((0, 0), (0, lane_pad)), constant_values=-100.0)
        t = jnp.pad(t, ((0, 0), (0, lane_pad)), constant_values=0.0)
    x = x.reshape(n, nb, _LANE)      # layout-preserving (free) when lane_pad == 0
    t = t.reshape(n, nb, _LANE)

    # ---- tiling --------------------------------------------------------------
    x_item = jnp.dtype(x.dtype).itemsize
    t_item = jnp.dtype(t.dtype).itemsize
    # Packed-sublane multiple of the narrowest dtype (8 f32 / 16 bf16 / 32 int8).
    sub_mult = 8 * max(1, 4 // min(x_item, t_item))
    block_budget = 1 * 1024 * 1024                  # ~1 MiB per input block
    s_max = max(sub_mult,
                (block_budget // (n * _LANE * max(x_item, t_item)))
                // sub_mult * sub_mult)

    num_tc = _num_tensorcores()
    num_splits = 2 if (num_tc >= 2 and nb >= 8 * sub_mult) else 1

    per_split = _cdiv(nb, num_splits)
    inner_t = max(4, _cdiv(per_split, s_max))       # aim for >= 4 inner steps
    inner_t = min(inner_t, max(1, _cdiv(per_split, sub_mult)))
    s = max(sub_mult, min(s_max, _round_up(_cdiv(per_split, inner_t), sub_mult)))

    if s > nb:
        # Truly tiny inputs: pad the (small) block axis so one full block covers
        # everything; pad values contribute ~0 as above.
        x = jnp.pad(x, ((0, 0), (0, s - nb), (0, 0)), constant_values=-100.0)
        t = jnp.pad(t, ((0, 0), (0, s - nb), (0, 0)), constant_values=0.0)
        nb = s

    steps_total = _cdiv(nb, s)
    inner = _cdiv(steps_total, num_splits)

    if num_splits * inner > steps_total:
        # Clamp so the DMA never targets a fully out-of-range block; the kernel
        # skips accumulation for those idle steps.
        def idx_map(sp, k):
            return (0, jnp.minimum(sp * inner + k, steps_total - 1), 0)
    else:
        def idx_map(sp, k):
            return (0, sp * inner + k, 0)

    in_spec = pl.BlockSpec((n, s, _LANE), idx_map)
    kernel = _make_kernel(n, s, inner, steps_total, nb, num_splits)

    partials = pl.pallas_call(
        kernel,
        out_shape=jax.ShapeDtypeStruct((num_splits, 4, n), jnp.float32),
        grid_spec=pltpu.PrefetchScalarGridSpec(
            num_scalar_prefetch=0,
            grid=(num_splits, inner),
            in_specs=[in_spec, in_spec],
            out_specs=pl.BlockSpec((1, 4, n), lambda sp, k: (sp, 0, 0)),
            scratch_shapes=[pltpu.VMEM((4, n, _LANE), jnp.float32)],
        ),
        compiler_params=pltpu.CompilerParams(
            dimension_semantics=("parallel", "arbitrary"),
            vmem_limit_bytes=32 * 1024 * 1024,
        ),
    )(x, t)

    # Tiny scalar epilogue in JAX (combines the per-split partial sums).
    sums = jnp.sum(partials, axis=0)                # (4, N)
    smooth = 1e-5
    bce_mean = jnp.sum(sums[0]) / float(n * f)      # ORIGINAL n*f, not padded
    dice = (2.0 * sums[1] + smooth) / (sums[2] + sums[3] + smooth)   # (N,)
    dice_loss = 1.0 - jnp.sum(dice) / float(n)
    return 0.5 * bce_mean + dice_loss


def _reference_loss(logits, target):
    # Pure-JAX reference matching the PyTorch module exactly.
    bce = jnp.mean(jnp.maximum(logits, 0.0) - logits * target
                   + jnp.log1p(jnp.exp(-jnp.abs(logits))))
    p = jax.nn.sigmoid(logits)
    n = logits.shape[0]
    p = p.reshape(n, -1)
    t = target.reshape(n, -1)
    smooth = 1e-5
    inter = jnp.sum(p * t, axis=1)
    dice = (2.0 * inter + smooth) / (jnp.sum(p, axis=1) + jnp.sum(t, axis=1) + smooth)
    dice = 1.0 - jnp.sum(dice) / n
    return 0.5 * bce + dice


if __name__ == "__main__":
    key = jax.random.PRNGKey(0)
    k1, k2 = jax.random.split(key)

    # Small shapes consistent with a segmentation loss: (batch=2, channels=4, 16x16).
    logits = jax.random.normal(k1, (2, 4, 16, 16), dtype=jnp.float32)
    target = jax.random.uniform(k2, (2, 4, 16, 16), dtype=jnp.float32)

    loss = jax.block_until_ready(bce_dice_loss(logits, target))
    ref = jax.block_until_ready(_reference_loss(logits, target))
    assert jnp.allclose(loss, ref, rtol=1e-4, atol=1e-5), (loss, ref)

    print("KERNEL_OK")
</pallas_src>

<mosaic_0001>
module attributes {stable_mosaic.version = 11 : i64} {
  func.func @kernel(%arg0: i32, %arg1: i32, %arg2: memref<2x8x128xf32, #tpu.memory_space<vmem>>, %arg3: memref<2x8x128xf32, #tpu.memory_space<vmem>>, %arg4: memref<1x4x2xf32, #tpu.memory_space<vmem>>, %arg5: memref<4x2x128xf32, #tpu.memory_space<vmem>>) attributes {dimension_semantics = [#tpu.dimension_semantics<parallel>, #tpu.dimension_semantics<arbitrary>], iteration_bounds = array<i64: 1, 1>, scalar_prefetch = 0 : i64, scratch_operands = 1 : i64, tpu.core_type = #tpu.core_type<tc>, window_params = [{transform_indices = @transform_0, window_bounds = array<i64: 2, 8, 128>}, {transform_indices = @transform_1, window_bounds = array<i64: 2, 8, 128>}, {transform_indices = @transform_2, window_bounds = array<i64: 1, 4, 2>}]} {
    %c0_i32 = arith.constant 0 : i32
    %0 = arith.cmpi eq, %arg1, %c0_i32 : i32
    %1 = arith.extui %0 : i1 to i32
    %c0_i32_0 = arith.constant 0 : i32
    %2 = arith.cmpi ne, %1, %c0_i32_0 : i32
    scf.if %2 {
      %cst_23 = arith.constant 0.000000e+00 : f32
      %43 = vector.broadcast %cst_23 : f32 to vector<4x2x128xf32>
      %c0_24 = arith.constant 0 : index
      %c0_25 = arith.constant 0 : index
      %c0_26 = arith.constant 0 : index
      %44 = vector.load %arg5[%c0_24, %c0_25, %c0_26] : memref<4x2x128xf32, #tpu.memory_space<vmem>>, vector<4x2x128xf32>
      tpu.vector_store %arg5[%c0_24, %c0_25, %c0_26], %43 {strides = array<i32>} : memref<4x2x128xf32, #tpu.memory_space<vmem>>, vector<4x2x128xf32>,
    } else {
    }
    %c0 = arith.constant 0 : index
    %c0_1 = arith.constant 0 : index
    %c0_2 = arith.constant 0 : index
    %3 = vector.load %arg2[%c0, %c0_1, %c0_2] : memref<2x8x128xf32, #tpu.memory_space<vmem>>, vector<2x8x128xf32>
    %c0_3 = arith.constant 0 : index
    %c0_4 = arith.constant 0 : index
    %c0_5 = arith.constant 0 : index
    %4 = vector.load %arg3[%c0_3, %c0_4, %c0_5] : memref<2x8x128xf32, #tpu.memory_space<vmem>>, vector<2x8x128xf32>
    %5 = math.absf %3 : vector<2x8x128xf32>
    %cst = arith.constant 0.000000e+00 : f32
    %6 = vector.broadcast %cst : f32 to vector<2x8x128xf32>
    %7 = arith.subf %6, %5 : vector<2x8x128xf32>
    %8 = math.exp %7 : vector<2x8x128xf32>
    %cst_6 = arith.constant 0.000000e+00 : f32
    %9 = vector.broadcast %cst_6 : f32 to vector<2x8x128xf32>
    %10 = arith.cmpf oge, %3, %9 : vector<2x8x128xf32>
    %cst_7 = arith.constant 1.000000e+00 : f32
    %11 = vector.broadcast %cst_7 : f32 to vector<2x8x128xf32>
    %12 = arith.addf %11, %8 : vector<2x8x128xf32>
    %13 = tpu.reciprocal %12 {approx = true} : vector<2x8x128xf32> -> vector<2x8x128xf32>
    %14 = arith.mulf %12, %13 : vector<2x8x128xf32>
    %cst_8 = arith.constant 2.000000e+00 : f32
    %15 = vector.broadcast %cst_8 : f32 to vector<2x8x128xf32>
    %16 = arith.subf %15, %14 : vector<2x8x128xf32>
    %17 = arith.mulf %13, %16 : vector<2x8x128xf32>
    %cst_9 = arith.constant 1.000000e+00 : f32
    %18 = vector.broadcast %cst_9 : f32 to vector<2x8x128xf32>
    %19 = arith.select %10, %18, %8 : vector<2x8x128xi1>, vector<2x8x128xf32>
    %20 = arith.mulf %19, %17 : vector<2x8x128xf32>
    %cst_10 = arith.constant 0.000000e+00 : f32
    %21 = vector.broadcast %cst_10 : f32 to vector<2x8x128xf32>
    %22 = arith.select %10, %3, %21 : vector<2x8x128xi1>, vector<2x8x128xf32>
    %23 = arith.mulf %3, %4 : vector<2x8x128xf32>
    %24 = arith.subf %22, %23 : vector<2x8x128xf32>
    %25 = math.log1p %8 : vector<2x8x128xf32>
    %26 = arith.addf %24, %25 : vector<2x8x128xf32>
    %c0_11 = arith.constant 0 : index
    %c0_12 = arith.constant 0 : index
    %c0_13 = arith.constant 0 : index
    %27 = vector.load %arg5[%c0_11, %c0_12, %c0_13] : memref<4x2x128xf32, #tpu.memory_space<vmem>>, vector<4x2x128xf32>
    %cst_14 = arith.constant dense<0.000000e+00> : vector<2x128xf32>
    %28 = vector.multi_reduction <add>, %26, %cst_14 [1] : vector<2x8x128xf32> to vector<2x128xf32>
    %29 = arith.mulf %20, %4 : vector<2x8x128xf32>
    %cst_15 = arith.constant dense<0.000000e+00> : vector<2x128xf32>
    %30 = vector.multi_reduction <add>, %29, %cst_15 [1] : vector<2x8x128xf32> to vector<2x128xf32>
    %cst_16 = arith.constant dense<0.000000e+00> : vector<2x128xf32>
    %31 = vector.multi_reduction <add>, %20, %cst_16 [1] : vector<2x8x128xf32> to vector<2x128xf32>
    %cst_17 = arith.constant dense<0.000000e+00> : vector<2x128xf32>
    %32 = vector.multi_reduction <add>, %4, %cst_17 [1] : vector<2x8x128xf32> to vector<2x128xf32>
    %33 = vector.shape_cast %28 : vector<2x128xf32> to vector<1x2x128xf32>
    %34 = vector.shape_cast %30 : vector<2x128xf32> to vector<1x2x128xf32>
    %35 = vector.shape_cast %31 : vector<2x128xf32> to vector<1x2x128xf32>
    %36 = vector.shape_cast %32 : vector<2x128xf32> to vector<1x2x128xf32>
    %37 = tpu.concatenate %33, %34, %35, %36 in 0 : vector<1x2x128xf32>, vector<1x2x128xf32>, vector<1x2x128xf32>, vector<1x2x128xf32> -> vector<4x2x128xf32>
    %38 = arith.addf %27, %37 : vector<4x2x128xf32>
    %c0_18 = arith.constant 0 : index
    %c0_19 = arith.constant 0 : index
    %c0_20 = arith.constant 0 : index
    %39 = vector.load %arg5[%c0_18, %c0_19, %c0_20] : memref<4x2x128xf32, #tpu.memory_space<vmem>>, vector<4x2x128xf32>
    tpu.vector_store %arg5[%c0_18, %c0_19, %c0_20], %38 {strides = array<i32>} : memref<4x2x128xf32, #tpu.memory_space<vmem>>, vector<4x2x128xf32>,
    %c0_i32_21 = arith.constant 0 : i32
    %40 = arith.cmpi eq, %arg1, %c0_i32_21 : i32
    %41 = arith.extui %40 : i1 to i32
    %c0_i32_22 = arith.constant 0 : i32
    %42 = arith.cmpi ne, %41, %c0_i32_22 : i32
    scf.if %42 {
      %c0_23 = arith.constant 0 : index
      %c0_24 = arith.constant 0 : index
      %c0_25 = arith.constant 0 : index
      %43 = vector.load %arg5[%c0_23, %c0_24, %c0_25] : memref<4x2x128xf32, #tpu.memory_space<vmem>>, vector<4x2x128xf32>
      %cst_26 = arith.constant dense<0.000000e+00> : vector<4x2xf32>
      %44 = vector.multi_reduction <add>, %43, %cst_26 [2] : vector<4x2x128xf32> to vector<4x2xf32>
      %c0_27 = arith.constant 0 : index
      %c0_28 = arith.constant 0 : index
      %c0_29 = arith.constant 0 : index
      %45 = vector.load %arg4[%c0_27, %c0_28, %c0_29] : memref<1x4x2xf32, #tpu.memory_space<vmem>>, vector<1x4x2xf32>
      %46 = vector.shape_cast %45 : vector<1x4x2xf32> to vector<4x2xf32>
      %47 = vector.shape_cast %44 : vector<4x2xf32> to vector<1x4x2xf32>
      tpu.vector_store %arg4[%c0_27, %c0_28, %c0_29], %47 {strides = array<i32>} : memref<1x4x2xf32, #tpu.memory_space<vmem>>, vector<1x4x2xf32>,
    } else {
    }
    return
  }
  func.func @transform_0(%arg0: i32, %arg1: i32) -> (i32, i32, i32) {
    %c1_i32 = arith.constant 1 : i32
    %0 = arith.muli %arg0, %c1_i32 : i32
    %1 = arith.addi %0, %arg1 : i32
    %c0_i32 = arith.constant 0 : i32
    %c0_i32_0 = arith.constant 0 : i32
    %c0_i32_1 = arith.constant 0 : i32
    return %c0_i32, %1, %c0_i32_0 : i32, i32, i32
  }
  func.func @transform_1(%arg0: i32, %arg1: i32) -> (i32, i32, i32) {
    %c1_i32 = arith.constant 1 : i32
    %0 = arith.muli %arg0, %c1_i32 : i32
    %1 = arith.addi %0, %arg1 : i32
    %c0_i32 = arith.constant 0 : i32
    %c0_i32_0 = arith.constant 0 : i32
    %c0_i32_1 = arith.constant 0 : i32
    return %c0_i32, %1, %c0_i32_0 : i32, i32, i32
  }
  func.func @transform_2(%arg0: i32, %arg1: i32) -> (i32, i32, i32) {
    %c0_i32 = arith.constant 0 : i32
    %c0_i32_0 = arith.constant 0 : i32
    %c0_i32_1 = arith.constant 0 : i32
    return %arg0, %c0_i32, %c0_i32_0 : i32, i32, i32
  }
}

</mosaic_0001>

<bundles_post_ra>
// kernel: tpu_custom_call.1
= control target key start
LH: loop header
LB: loop body
LE: loop exit
PB: predicated region body
PF: predicated region fallthrough
CT: control target
= control target key end

     0   :  { %7 = vsyncpa [#allocation4], 0  ;;  %s375_s0 = inlined_call_operand.hbm [shape: f32[2,8,128], index: 0, kind: input, shape index: {}]   ;;  %s376_s1 = inlined_call_operand.hbm [shape: f32[2,8,128], index: 1, kind: input, shape index: {}]   ;;  %s377_s2 = inlined_call_operand.vmem [shape: f32[1,4,2], index: 2, kind: output, shape index: {}]  }
   0x1   :  { %8 = vsyncpa [#allocation6], 0  ;;  %s309_s9 = smov [#allocation3]  }
   0x2   :  { %s17_s10 = sshll.u32 %s309_s9, 4  ;;  %s18_s10 = int_to_ptr.vmem [resolvable:$true] %s17_s10 }
   0x3   :  { %s273_s11 = scalar_lea.vmem %s18_s10, 256  ;;  %p278_p1 = scmp.lt.s32.totalorder %s18_s10, %s18_s10 }
   0x4   :  { %p274_p0 = scmp.ne.s32.totalorder %s18_s10, %s273_s11  ;;  %p279_p2 = scmp.lt.s32.totalorder %s273_s11, %s273_s11 }
   0x6   :  { %p280_p3 = por %p279_p2, %p278_p1 }
   0x8   :  { %p281_p4 = pnand %p280_p3, %p274_p0 }
   0xa   :  { %284 = shalt.err (!%p281_p4)
}
   0xb   :  { %s310_s12 = smov 128   ;;  %s311_s13 = smov 8  }
   0xc   :  { %23 = dma.hbm_to_vmem [thread:$0]  %s375_s0, 256, %s18_s10, [#allocation4], %s310_s12, %s310_s12, %s311_s13  }
   0xd   :  { %s312_s16 = smov [#allocation5]  }
   0xe   :  { %s32_s17 = sshll.u32 %s312_s16, 4  ;;  %s33_s17 = int_to_ptr.vmem [resolvable:$true] %s32_s17 }
   0xf   :  { %s293_s18 = scalar_lea.vmem %s33_s17, 256  ;;  %p298_p6 = scmp.lt.s32.totalorder %s33_s17, %s33_s17 }
  0x10   :  { %p294_p5 = scmp.ne.s32.totalorder %s33_s17, %s293_s18  ;;  %p299_p7 = scmp.lt.s32.totalorder %s293_s18, %s293_s18 }
  0x12   :  { %p300_p8 = por %p299_p7, %p298_p6 }
  0x14   :  { %p301_p9 = pnand %p300_p8, %p294_p5 }
  0x16   :  { %304 = shalt.err (!%p301_p9)
}
  0x17   :  { %38 = dma.hbm_to_vmem [thread:$0]  %s376_s1, 256, %s33_s17, [#allocation6], %s310_s12, %s310_s12, %s311_s13  }
  0x18   :  { %305 = dma.done.wait [#allocation4], 256  }
  0x19   :  { %306 = vsyncadd [#allocation4], 4294967040 }
  0x1a   :  { %307 = dma.done.wait [#allocation6], 256  }
  0x1b   :  { %308 = vsyncadd [#allocation6], 4294967040  ;;  %v313_v0 = vmov 0.0   ;;  %v335_v1 = vld [vmem:[#allocation3] sm:$0xff]  ;;  %v337_v2 = vld [vmem:[#allocation3 + $0x8] sm:$0xff]  ;;  %vm172_vm0 = vcmask 1041409  }
  0x1c   :  { %51 = vst [vmem:[#allocation2] sm:$0x3] %v313_v0  ;;  %52 = vst [vmem:[#allocation2 + $0x2] sm:$0x3] %v313_v0  ;;  %v59_v3 = vand.u32 2147483647, %v335_v1 }
  0x1d   :  { %53 = vst [vmem:[#allocation2 + $0x4] sm:$0x3] %v313_v0  ;;  %54 = vst [vmem:[#allocation2 + $0x6] sm:$0x3] %v313_v0  ;;  %v60_v4 = vand.u32 2147483647, %v337_v2 }
  0x1e   :  { %v341_v5 = vld [vmem:[#allocation5] sm:$0xff]  ;;  %v343_v6 = vld [vmem:[#allocation5 + $0x8] sm:$0xff]  ;;  %v61_v7 = vsub.f32 0.0, %v59_v3  ;;  %vm67_vm1 = vcmp.ge.f32.partialorder %v335_v1, 0.0  ;;  %vm68_vm2 = vcmp.ge.f32.partialorder %v337_v2, 0.0  ;;  %vm199_vm5 = vcmask 1041408  }
  0x1f   :  { %v62_v8 = vsub.f32 0.0, %v60_v4  ;;  %v151_v9 = vrot.slane %v341_v5, 4  ;;  %v157_v10 = vrot.slane %v343_v6, 4  ;;  %v85_v34 = vmul.f32 %v341_v5, %v335_v1 }
  0x20   :  { %v63_v11 = vmul.f32 1.442695, %v61_v7  ;;  %v83_v37 = vsel %vm67_vm1, %v335_v1, 0.0  ;;  %v86_v38 = vmul.f32 %v343_v6, %v337_v2  ;;  %v84_v41 = vsel %vm68_vm2, %v337_v2, 0.0 }
  0x21   :  { %v65_v12 = vmul.f32 1.442695, %v62_v8  ;;  %v152_v13 = vadd.f32 %v151_v9, %v341_v5  ;;  %v158_v14 = vadd.f32 %v157_v10, %v343_v6  ;;  %v87_v46 = vsub.f32 %v83_v37, %v85_v34 }
  0x22   :  { %253 = vpow2.f32 %v63_v11  ;;  %v88_v50 = vsub.f32 %v84_v41, %v86_v38  ;;  %vm235_vm6 = vcmask 1042434   ;;  %vm237_vm7 = vcmask 1043459  }
  0x23   :  { %255 = vpow2.f32 %v65_v12  ;;  %v153_v15 = vrot.slane %v152_v13, 2  ;;  %v159_v16 = vrot.slane %v158_v14, 2  ;;  %v109_v37 = vld [vmem:[#allocation2] sm:$0x3]  ;;  %vm240_vm8 = vcmask 11264  }
  0x24   :  { %v112_v23 = vld [vmem:[#allocation2 + $0x6] sm:$0x3] }
  0x25   :  { %v154_v17 = vadd.f32 %v153_v15, %v152_v13  ;;  %v160_v18 = vadd.f32 %v159_v16, %v158_v14 }
  0x27   :  { %v155_v19 = vrot.slane %v154_v17, 1  ;;  %v161_v20 = vrot.slane %v160_v18, 1 }
  0x29   :  { %v156_v21 = vadd.f32 %v155_v19, %v154_v17  ;;  %v162_v22 = vadd.f32 %v161_v20, %v160_v18 }
  0x2b   :  { %v178_v24 = vrot.slane %v162_v22, 7 }
  0x2d   :  { %v179_v25 = vsel %vm172_vm0, %v178_v24, %v156_v21 }
  0x2e   :  { %v187_v26 = vadd.f32 %v179_v25, %v112_v23 }
  0x2f   :  { %v254_v27 = vpop.eup %253 }
  0x30   :  { %v256_v28 = vpop.eup %255  ;;  %v69_v29 = vadd.f32 1.0, %v254_v27  ;;  %191 = vst [vmem:[#allocation2 + $0x6] sm:$0x3] %v187_v26  ;;  %v92_v31 = vmul.f32 -0.5, %v254_v27  ;;  %v95_v35 = vand.u32 2147483647, %v254_v27 }
  0x31   :  { %v70_v30 = vadd.f32 1.0, %v256_v28  ;;  %v101_v32 = vmul.f32 -0.5, %v256_v28  ;;  %v104_v39 = vand.u32 2147483647, %v256_v28  ;;  %v79_v55 = vsel %vm67_vm1, 1.0, %v254_v27 }
  0x32   :  { %257 = vrcp.f32 %v69_v29  ;;  %v93_v33 = vadd.f32 1.0, %v92_v31  ;;  %vm96_vm3 = vcmp.lt.f32.partialorder %v95_v35, 0.0004427343  ;;  %v80_v58 = vsel %vm68_vm2, 1.0, %v256_v28 }
  0x33   :  { %259 = vrcp.f32 %v70_v30  ;;  %v102_v36 = vadd.f32 1.0, %v101_v32  ;;  %vm105_vm4 = vcmp.lt.f32.partialorder %v104_v39, 0.0004427343  ;;  %v111_v39 = vld [vmem:[#allocation2 + $0x4] sm:$0x3] }
  0x34   :  { %261 = vlog2.f32 %v69_v29  ;;  %v94_v43 = vmul.f32 %v254_v27, %v93_v33 }
  0x35   :  { %263 = vlog2.f32 %v70_v30  ;;  %v103_v47 = vmul.f32 %v256_v28, %v102_v36 }
  0x3f   :  { %v258_v40 = vpop.eup %257 }
  0x40   :  { %v260_v42 = vpop.eup %259  ;;  %v73_v44 = vmul.f32 %v258_v40, %v69_v29 }
  0x41   :  { %v262_v45 = vpop.eup %261  ;;  %v74_v48 = vmul.f32 %v260_v42, %v70_v30 }
  0x42   :  { %v264_v49 = vpop.eup %263  ;;  %v91_v51 = vmul.f32 0.6931472, %v262_v45  ;;  %v75_v52 = vsub.f32 2.0, %v73_v44 }
  0x43   :  { %v100_v53 = vmul.f32 0.6931472, %v264_v49  ;;  %v76_v54 = vsub.f32 2.0, %v74_v48 }
  0x44   :  { %v97_v56 = vsel %vm96_vm3, %v94_v43, %v91_v51  ;;  %v77_v57 = vmul.f32 %v258_v40, %v75_v52 }
  0x45   :  { %v106_v59 = vsel %vm105_vm4, %v103_v47, %v100_v53  ;;  %v107_v60 = vadd.f32 %v97_v56, %v87_v46  ;;  %v78_v61 = vmul.f32 %v260_v42, %v76_v54  ;;  %v110_v46 = vld [vmem:[#allocation2 + $0x2] sm:$0x3]  ;;  %v198_v54 = vld [vmem:[#allocation2 + $0x6] sm:$0x3] }
  0x46   :  { %v108_v62 = vadd.f32 %v106_v59, %v88_v50  ;;  %v81_v63 = vmul.f32 %v79_v55, %v77_v57  ;;  %v216_v59 = vlaneseq }
  0x47   :  { %v113_v0 = vrot.slane %v107_v60, 4  ;;  %v82_v3 = vmul.f32 %v80_v58, %v78_v61  ;;  %v209_v58 = vsel %vm199_vm5, %v198_v54, 0.0 }
  0x48   :  { %v119_v4 = vrot.slane %v108_v62, 4  ;;  %v139_v7 = vrot.slane %v81_v63, 4  ;;  %v125_v8 = vmul.f32 %v81_v63, %v341_v5  ;;  %v219_v61 = vshrl.u32 %v216_v59, 7 }
  0x49   :  { %v114_v9 = vadd.f32 %v113_v0, %v107_v60  ;;  %v145_v10 = vrot.slane %v82_v3, 4  ;;  %v126_v1 = vmul.f32 %v82_v3, %v343_v6  ;;  %v217_v60 = vand.u32 127, %v216_v59 }
  0x4a   :  { %v120_v11 = vadd.f32 %v119_v4, %v108_v62  ;;  %v140_v12 = vadd.f32 %v139_v7, %v81_v63  ;;  %v127_v13 = vrot.slane %v125_v8, 4 }
  0x4b   :  { %v115_v2 = vrot.slane %v114_v9, 2  ;;  %v146_v14 = vadd.f32 %v145_v10, %v82_v3  ;;  %v133_v15 = vrot.slane %v126_v1, 4  ;;  %v220_v63 = vsub.s32 %v217_v60, %v219_v61 }
  0x4c   :  { %v121_v16 = vrot.slane %v120_v11, 2  ;;  %v141_v17 = vrot.slane %v140_v12, 2  ;;  %v128_v18 = vadd.f32 %v127_v13, %v125_v8 }
  0x4d   :  { %v116_v19 = vadd.f32 %v115_v2, %v114_v9  ;;  %v147_v20 = vrot.slane %v146_v14, 2  ;;  %v134_v21 = vadd.f32 %v133_v15, %v126_v1 }
  0x4e   :  { %v122_v22 = vadd.f32 %v121_v16, %v120_v11  ;;  %v142_v23 = vadd.f32 %v141_v17, %v140_v12  ;;  %v129_v24 = vrot.slane %v128_v18, 2 }
  0x4f   :  { %v117_v5 = vrot.slane %v116_v19, 1  ;;  %v148_v25 = vadd.f32 %v147_v20, %v146_v14  ;;  %v135_v26 = vrot.slane %v134_v21, 2 }
  0x50   :  { %v123_v27 = vrot.slane %v122_v22, 1  ;;  %v143_v6 = vrot.slane %v142_v23, 1  ;;  %v130_v28 = vadd.f32 %v129_v24, %v128_v18 }
  0x51   :  { %v149_v29 = vrot.slane %v148_v25, 1  ;;  %v136_v30 = vadd.f32 %v135_v26, %v134_v21  ;;  %v118_v31 = vadd.f32 %v117_v5, %v116_v19 }
  0x52   :  { %v124_v32 = vadd.f32 %v123_v27, %v122_v22  ;;  %v131_v33 = vrot.slane %v130_v28, 1  ;;  %v144_v34 = vadd.f32 %v143_v6, %v142_v23 }
  0x53   :  { %v150_v35 = vadd.f32 %v149_v29, %v148_v25  ;;  %v137_v36 = vrot.slane %v136_v30, 1 }
  0x54   :  { %v171_v38 = vrot.slane %v124_v32, 7  ;;  %v132_v41 = vadd.f32 %v131_v33, %v130_v28 }
  0x55   :  { %v176_v40 = vrot.slane %v150_v35, 7  ;;  %v138_v42 = vadd.f32 %v137_v36, %v136_v30 }
  0x56   :  { %v173_v43 = vsel %vm172_vm0, %v171_v38, %v118_v31 }
  0x57   :  { %v184_v44 = vadd.f32 %v173_v43, %v109_v37  ;;  %v177_v45 = vsel %vm172_vm0, %v176_v40, %v144_v34  ;;  %v174_v47 = vrot.slane %v138_v42, 7 }
  0x58   :  { %v186_v48 = vadd.f32 %v177_v45, %v111_v39 }
  0x59   :  { %188 = vst [vmem:[#allocation2] sm:$0x3] %v184_v44  ;;  %v175_v49 = vsel %vm172_vm0, %v174_v47, %v132_v41 }
  0x5a   :  { %190 = vst [vmem:[#allocation2 + $0x4] sm:$0x3] %v186_v48  ;;  %v185_v50 = vadd.f32 %v175_v49, %v110_v46 }
  0x5c   :  { %189 = vst [vmem:[#allocation2 + $0x2] sm:$0x3] %v185_v50 }
  0x60   :  { %v195_v51 = vld [vmem:[#allocation2] sm:$0x3] }
  0x61   :  { %v200_v52 = vsel %vm199_vm5, %v195_v51, 0.0  ;;  %v197_v53 = vld [vmem:[#allocation2 + $0x4] sm:$0x3] }
  0x62   :  { %201 = vadd.xlane.f32.xlu0 %v200_v52  ;;  %v206_v55 = vsel %vm199_vm5, %v197_v53, 0.0 }
  0x63   :  { %207 = vadd.xlane.f32.xlu1 %v206_v55  ;;  %v196_v56 = vld [vmem:[#allocation2 + $0x2] sm:$0x3] }
  0x64   :  { %v203_v57 = vsel %vm199_vm5, %v196_v56, 0.0 }
  0x66   :  { %204 = vadd.xlane.f32.xlu0 %v203_v57 }
  0x67   :  { %210 = vadd.xlane.f32.xlu1 %v209_v58 }
  0xeb   :  { %v202_v62 = vpop.xlane.xlu0 %201 }
  0xec   :  { %v208_v0 = vpop.xlane.xlu1 %207  ;;  %v221_v4 = vrot.slane %v202_v62, %v220_v63 }
  0xed   :  { %v229_v9 = vrot.slane %v208_v0, %v220_v63 }
  0xef   :  { %v205_v3 = vpop.xlane.xlu0 %204 }
  0xf0   :  { %v225_v7 = vrot.slane %v205_v3, %v220_v63  ;;  %v211_v8 = vpop.xlane.xlu1 %210 }
  0xf1   :  { %v233_v10 = vrot.slane %v211_v8, %v220_v63 }
  0xf2   :  { %v234_v1 = vsel %vm172_vm0, %v225_v7, %v221_v4 }
  0xf3   :  { %v236_v11 = vsel %vm235_vm6, %v229_v9, %v234_v1 }
  0xf4   :  { %v238_v12 = vsel %vm237_vm7, %v233_v10, %v236_v11 }
  0xf5   :  { %241 = vst.msk [vmem:[%s377_s2] sm:$0xf] %vm240_vm8, %v238_v12 }
  0xf6   :  { %246 = vsyncpa [#allocation4], 1 }
  0xf7   :  { %247 = vsyncpa [#allocation6], 1 }

</bundles_post_ra>
